<compile_context>
chip_gen: v6e
topology: v6e:2x2x1
jax: 0.10.0
libtpu: 0.0.40
codegen_flags: <defaults>
</compile_context>

<pallas_src>
import jax
import jax.numpy as jnp
from jax.experimental import pallas as pl
from jax.experimental.pallas import tpu as pltpu

_HIDDEN = 128
_LANE = 128


def _round_up(n, m):
    return (n + m - 1) // m * m


def _actor_kernel(x_ref, w1_ref, w2b_ref, out_ref):
    """One batch tile of: relu(x_aug @ W1_aug) @ W2_pad + b2_pad.

    x_ref   : [TB, K+1]     compute dtype; last column is ones (folds b1)
    w1_ref  : [K+1, H]      compute dtype; last row is b1
    w2b_ref : [H+1, N_PAD]  compute dtype; rows 0..H-1 = zero-padded W2,
                            row H = zero-padded b2
    out_ref : [TB, N_PAD]   output dtype, lane-dense (N_PAD % 128 == 0)
    """
    hidden = w1_ref.shape[1]

    # Layer 1 (bias folded in via the ones column).  f32 MXU accumulation.
    # NOTE: K = obs_dim + 1 is tiny, so the MXU is underutilized here; the
    # real win is amortizing launch/DMA overhead over a pipelined batch grid.
    h = jnp.dot(x_ref[...], w1_ref[...], preferred_element_type=jnp.float32)
    h = jnp.maximum(h, 0.0)  # ReLU in f32 (v5e has no bf16 VPU)

    # Layer 2: W2 and b2 live in one stacked, lane-dense, VMEM-resident input.
    w2 = w2b_ref[:hidden, :]
    b2 = w2b_ref[hidden:hidden + 1, :]
    o = jnp.dot(h.astype(w2.dtype), w2, preferred_element_type=jnp.float32)
    o = o + b2.astype(jnp.float32)

    out_ref[...] = o.astype(out_ref.dtype)


def actor_forward(x, w1, b1, w2, b2, *, compute_dtype=jnp.bfloat16, block_b=1024):
    """Pallas TPU forward of Linear(in, 128) -> ReLU -> Linear(128, n_actions).

    x: [B, in_dim] f32.  w1: [in_dim, 128], b1: [1, 128],
    w2: [128, n_actions], b2: [1, n_actions] (already transposed vs torch).
    compute_dtype: MXU operand dtype (bf16 default; accumulation is f32).
    """
    B, in_dim = x.shape
    hidden = w1.shape[1]
    n_actions = w2.shape[1]
    assert w1.shape == (in_dim, hidden)
    assert b1.shape == (1, hidden)
    assert w2.shape == (hidden, n_actions)
    assert b2.shape == (1, n_actions)

    out_dtype = x.dtype

    # ---- wrapper-side layout plumbing (cheap XLA ops) -----------------------
    # 1) Fold b1 into W1 via an appended ones column on x.
    # 2) Pad n_actions to a multiple of 128 -> lane-dense, unmasked output store.
    # 3) Stack padded W2 and padded b2 -> 3 kernel inputs total.
    n_pad = _round_up(n_actions, _LANE)
    k_aug = in_dim + 1

    x_aug = jnp.concatenate(
        [x, jnp.ones((B, 1), dtype=x.dtype)], axis=1).astype(compute_dtype)
    w1_aug = jnp.concatenate(
        [w1, b1.reshape(1, hidden)], axis=0).astype(compute_dtype)
    w2_pad = jnp.zeros((hidden, n_pad), compute_dtype).at[:, :n_actions].set(
        w2.astype(compute_dtype))
    b2_pad = jnp.zeros((1, n_pad), compute_dtype).at[:, :n_actions].set(
        b2.reshape(1, n_actions).astype(compute_dtype))
    w2b = jnp.concatenate([w2_pad, b2_pad], axis=0)  # [hidden + 1, n_pad]

    # ---- pipelined batch grid ----------------------------------------------
    # x / out tiles advance with the grid step (auto double-buffered DMA);
    # the weight specs return (0, 0) so W1|b1 / W2|b2 stay VMEM-resident.
    block_b = _round_up(block_b, 16)           # bf16 sublane packing friendly
    tb = min(block_b, _round_up(B, 16))
    b_pad = _round_up(B, tb)
    if b_pad != B:
        x_aug = jnp.pad(x_aug, ((0, b_pad - B), (0, 0)))
    grid = (b_pad // tb,)

    # VMEM footprint at tb=1024, n_pad=128:
    #   2 x-bufs (bf16)  ~  20 KiB
    #   2 out-bufs (f32) ~   1 MiB
    #   weights          ~  70 KiB
    # well under the default scoped VMEM limit on v5e/v6e/v7x, so no
    # vmem_limit_bytes override is needed.
    out_pad = pl.pallas_call(
        _actor_kernel,
        out_shape=jax.ShapeDtypeStruct((b_pad, n_pad), out_dtype),
        grid_spec=pltpu.PrefetchScalarGridSpec(
            num_scalar_prefetch=0,
            grid=grid,
            in_specs=[
                pl.BlockSpec((tb, k_aug), lambda i: (i, 0)),          # x tile
                pl.BlockSpec((k_aug, hidden), lambda i: (0, 0)),      # resident W1 | b1
                pl.BlockSpec((hidden + 1, n_pad), lambda i: (0, 0)),  # resident W2 | b2
            ],
            out_specs=pl.BlockSpec((tb, n_pad), lambda i: (i, 0)),
        ),
        compiler_params=pltpu.CompilerParams(
            # Batch tiles are independent -> megacore-shardable on v7x;
            # harmless on single-TC v5e/v6e.
            dimension_semantics=("parallel",),
        ),
    )(x_aug, w1_aug, w2b)

    # Free XLA slice back to the logical [B, n_actions] output.
    return out_pad[:B, :n_actions]


def init_actor_params(key, input_size, n_actions, hidden=_HIDDEN, dtype=jnp.float32):
    """Deterministic init mimicking nn.Linear's uniform(-1/sqrt(fan_in), +)."""
    k1, k2, k3, k4 = jax.random.split(key, 4)
    bound1 = 1.0 / (input_size ** 0.5)
    bound2 = 1.0 / (hidden ** 0.5)
    w1 = jax.random.uniform(k1, (input_size, hidden), dtype, -bound1, bound1)
    b1 = jax.random.uniform(k2, (1, hidden), dtype, -bound1, bound1)
    w2 = jax.random.uniform(k3, (hidden, n_actions), dtype, -bound2, bound2)
    b2 = jax.random.uniform(k4, (1, n_actions), dtype, -bound2, bound2)
    return w1, b1, w2, b2


def _reference(x, w1, b1, w2, b2):
    return jnp.maximum(x @ w1 + b1, 0.0) @ w2 + b2


if __name__ == "__main__":
    key = jax.random.PRNGKey(0)
    k_x, k_p, k_x2 = jax.random.split(key, 3)

    input_size = 4      # e.g. CartPole observation dim
    n_actions = 2

    w1, b1, w2, b2 = init_actor_params(k_p, input_size, n_actions)

    # --- small batch, exact f32 compute path (tight tolerance) --------------
    x_small = jax.random.normal(k_x, (8, input_size), dtype=jnp.float32)
    out_f32 = actor_forward(x_small, w1, b1, w2, b2, compute_dtype=jnp.float32)
    out_f32 = jax.block_until_ready(out_f32)
    ref_small = _reference(x_small, w1, b1, w2, b2)
    assert out_f32.shape == (8, n_actions)
    assert jnp.allclose(out_f32, ref_small, atol=1e-5, rtol=1e-5)

    # --- larger batch, default bf16 MXU operand path (f32 accumulation) -----
    # Exercises multi-step pipelined grid (B=2000 > block cap of 1024) + padding.
    x_big = jax.random.normal(k_x2, (2000, input_size), dtype=jnp.float32)
    out_bf16 = actor_forward(x_big, w1, b1, w2, b2)      # compute_dtype=bf16
    out_bf16 = jax.block_until_ready(out_bf16)
    ref_big = _reference(x_big, w1, b1, w2, b2)
    assert out_bf16.shape == (2000, n_actions)
    assert jnp.allclose(out_bf16, ref_big, atol=3e-2, rtol=3e-2)

    print("KERNEL_OK")
</pallas_src>

<mosaic_0001>
module attributes {stable_mosaic.version = 11 : i64} {
  func.func @_actor_kernel(%arg0: i32, %arg1: memref<16x5xf32, #tpu.memory_space<vmem>>, %arg2: memref<5x128xf32, #tpu.memory_space<vmem>>, %arg3: memref<129x128xf32, #tpu.memory_space<vmem>>, %arg4: memref<16x128xf32, #tpu.memory_space<vmem>>) attributes {dimension_semantics = [#tpu.dimension_semantics<parallel>], iteration_bounds = array<i64: 1>, scalar_prefetch = 0 : i64, scratch_operands = 0 : i64, tpu.core_type = #tpu.core_type<tc>, window_params = [{transform_indices = @transform_0, window_bounds = array<i64: 16, 5>}, {pipeline_mode = #tpu.pipeline_mode<synchronous>, transform_indices = @transform_1, window_bounds = array<i64: 5, 128>}, {pipeline_mode = #tpu.pipeline_mode<synchronous>, transform_indices = @transform_2, window_bounds = array<i64: 129, 128>}, {transform_indices = @transform_3, window_bounds = array<i64: 16, 128>}]} {
    %c0 = arith.constant 0 : index
    %c0_0 = arith.constant 0 : index
    %0 = vector.load %arg1[%c0, %c0_0] : memref<16x5xf32, #tpu.memory_space<vmem>>, vector<16x5xf32>
    %c0_1 = arith.constant 0 : index
    %c0_2 = arith.constant 0 : index
    %1 = vector.load %arg2[%c0_1, %c0_2] : memref<5x128xf32, #tpu.memory_space<vmem>>, vector<5x128xf32>
    %cst = arith.constant dense<0.000000e+00> : vector<16x128xf32>
    %2 = tpu.matmul %0, %1, %cst {dimension_numbers = #tpu.dot_dimension_numbers<[1], [0], [0], [1], [0, 0, 1, 1], [], []>} : vector<16x5xf32>, vector<5x128xf32>, vector<16x128xf32> -> vector<16x128xf32>
    %cst_3 = arith.constant 0.000000e+00 : f32
    %3 = vector.broadcast %cst_3 : f32 to vector<16x128xf32>
    %4 = arith.maximumf %2, %3 : vector<16x128xf32>
    %c0_4 = arith.constant 0 : index
    %c0_5 = arith.constant 0 : index
    %5 = vector.load %arg3[%c0_4, %c0_5] : memref<129x128xf32, #tpu.memory_space<vmem>>, vector<128x128xf32>
    %c128 = arith.constant 128 : index
    %c0_6 = arith.constant 0 : index
    %6 = vector.load %arg3[%c128, %c0_6] : memref<129x128xf32, #tpu.memory_space<vmem>>, vector<1x128xf32>
    %cst_7 = arith.constant dense<0.000000e+00> : vector<16x128xf32>
    %7 = tpu.matmul %4, %5, %cst_7 {dimension_numbers = #tpu.dot_dimension_numbers<[1], [0], [0], [1], [0, 0, 1, 1], [], []>} : vector<16x128xf32>, vector<128x128xf32>, vector<16x128xf32> -> vector<16x128xf32>
    %8 = vector.broadcast %6 : vector<1x128xf32> to vector<16x128xf32>
    %9 = arith.addf %7, %8 : vector<16x128xf32>
    %c0_8 = arith.constant 0 : index
    %c0_9 = arith.constant 0 : index
    %10 = vector.load %arg4[%c0_8, %c0_9] : memref<16x128xf32, #tpu.memory_space<vmem>>, vector<16x128xf32>
    tpu.vector_store %arg4[%c0_8, %c0_9], %9 {strides = array<i32>} : memref<16x128xf32, #tpu.memory_space<vmem>>, vector<16x128xf32>,
    return
  }
  func.func @transform_0(%arg0: i32) -> (i32, i32) {
    %c0_i32 = arith.constant 0 : i32
    %c0_i32_0 = arith.constant 0 : i32
    return %arg0, %c0_i32 : i32, i32
  }
  func.func @transform_1(%arg0: i32) -> (i32, i32) {
    %c0_i32 = arith.constant 0 : i32
    %c0_i32_0 = arith.constant 0 : i32
    %c0_i32_1 = arith.constant 0 : i32
    return %c0_i32, %c0_i32_0 : i32, i32
  }
  func.func @transform_2(%arg0: i32) -> (i32, i32) {
    %c0_i32 = arith.constant 0 : i32
    %c0_i32_0 = arith.constant 0 : i32
    %c0_i32_1 = arith.constant 0 : i32
    return %c0_i32, %c0_i32_0 : i32, i32
  }
  func.func @transform_3(%arg0: i32) -> (i32, i32) {
    %c0_i32 = arith.constant 0 : i32
    %c0_i32_0 = arith.constant 0 : i32
    return %arg0, %c0_i32 : i32, i32
  }
}

</mosaic_0001>

<bundles_post_ra>
// kernel: tpu_custom_call.1
= control target key start
LH: loop header
LB: loop body
LE: loop exit
PB: predicated region body
PF: predicated region fallthrough
CT: control target
= control target key end

     0   :  { %8 = vsyncpa [#allocation3], 0  ;;  %s393_s0 = inlined_call_operand.vmem [shape: f32[16,5], index: 0, kind: input, shape index: {}]   ;;  %s394_s1 = inlined_call_operand.vmem [shape: f32[5,128], index: 1, kind: input, shape index: {}]   ;;  %s395_s2 = inlined_call_operand.hbm [shape: f32[129,128], index: 2, kind: input, shape index: {}]   ;;  %s396_s3 = inlined_call_operand.hbm [shape: f32[16,128], index: 3, kind: output, shape index: {}]  }
   0x1   :  { %9 = vsyncpa [#allocation4], 0  ;;  %s348_s12 = smov [#allocation2]  }
   0x2   :  { %s19_s13 = sshll.u32 %s348_s12, 4  ;;  %s20_s13 = int_to_ptr.vmem [resolvable:$true] %s19_s13 }
   0x3   :  { %s312_s14 = scalar_lea.vmem %s20_s13, 2176  ;;  %p317_p1 = scmp.lt.s32.totalorder %s20_s13, %s20_s13 }
   0x4   :  { %p313_p0 = scmp.ne.s32.totalorder %s20_s13, %s312_s14  ;;  %p318_p2 = scmp.lt.s32.totalorder %s312_s14, %s312_s14 }
   0x6   :  { %p319_p3 = por %p318_p2, %p317_p1 }
   0x8   :  { %p320_p4 = pnand %p319_p3, %p313_p0 }
   0xa   :  { %323 = shalt.err (!%p320_p4)
}
   0xb   :  { %s349_s15 = smov 128   ;;  %s350_s16 = smov 8  }
   0xc   :  { %25 = dma.hbm_to_vmem [thread:$0]  %s395_s2, 2176, %s20_s13, [#allocation3], %s349_s15, %s349_s15, %s350_s16  }
   0xd   :  { %344 = dma.done.wait [#allocation3], 2176  }
   0xe   :  { %345 = vsyncadd [#allocation3], 4294965120  ;;  %vm39_vm0 = vcmask 1044480   ;;  %vm32_vm1 = vcmask 39936   ;;  %v31_v0 = vld [vmem:[%s394_s1] sm:$0x1f] }
   0xf   :  { %v29_v1 = vld [vmem:[%s393_s0] sm:$0xff]  ;;  %v30_v2 = vld [vmem:[%s393_s0 + $0x8] sm:$0xff]  ;;  %260 = vmatprep.subr.msk.mxu0 %vm39_vm0, %v31_v0  ;;  %v135_v3 = vld [vmem:[#allocation2 + $0x78] sm:$0xff]  ;;  %s351_s0 = smov [#allocation5]  }
  0x10   :  { %262 = vmatprep.mubr.msk.f32.mxu0 %vm32_vm1, %v29_v1  ;;  %v134_v4 = vld [vmem:[#allocation2 + $0x70] sm:$0xff]  ;;  %261 = vmatpush3.msk.msra.mxu0 %vm39_vm0, %v31_v0  ;;  %v133_v5 = vld [vmem:[#allocation2 + $0x68] sm:$0xff]  ;;  %v132_v6 = vld [vmem:[#allocation2 + $0x60] sm:$0xff]  ;;  %s223_s1 = sshll.u32 %s351_s0, 4  ;;  %s224_s1 = int_to_ptr.vmem [resolvable:$true] %s223_s1 }
  0x11   :  { %265 = vmatprep.subr.mxu1 %v135_v3  ;;  %263 = vmatmul.mubr.msk.f32.vlgmr.msra.gmra.mxu0 %vm32_vm1, %v30_v2  ;;  %v131_v7 = vld [vmem:[#allocation2 + $0x58] sm:$0xff]  ;;  %v130_v8 = vld [vmem:[#allocation2 + $0x50] sm:$0xff]  ;;  %v129_v9 = vld [vmem:[#allocation2 + $0x48] sm:$0xff]  ;;  %s324_s2 = scalar_lea.vmem %s224_s1, 256  ;;  %p329_p6 = scmp.lt.s32.totalorder %s224_s1, %s224_s1 }
  0x12   :  { %266 = vmatpush3.msra.mxu1 %v135_v3  ;;  %v128_v10 = vld [vmem:[#allocation2 + $0x40] sm:$0xff]  ;;  %v127_v11 = vld [vmem:[#allocation2 + $0x38] sm:$0xff]  ;;  %v126_v12 = vld [vmem:[#allocation2 + $0x30] sm:$0xff]  ;;  %p325_p5 = scmp.ne.s32.totalorder %s224_s1, %s324_s2  ;;  %p330_p7 = scmp.lt.s32.totalorder %s324_s2, %s324_s2 }
  0x13   :  { %267 = vmatprep.subr.mxu1 %v134_v4  ;;  %v125_v13 = vld [vmem:[#allocation2 + $0x28] sm:$0xff]  ;;  %v124_v14 = vld [vmem:[#allocation2 + $0x20] sm:$0xff]  ;;  %v123_v15 = vld [vmem:[#allocation2 + $0x18] sm:$0xff] }
  0x14   :  { %268 = vmatpush3.msra.mxu1 %v134_v4  ;;  %v122_v16 = vld [vmem:[#allocation2 + $0x10] sm:$0xff]  ;;  %v121_v17 = vld [vmem:[#allocation2 + $0x8] sm:$0xff]  ;;  %v120_v18 = vld [vmem:[#allocation2] sm:$0xff]  ;;  %p331_p8 = por %p330_p7, %p329_p6 }
  0x15   :  { %269 = vmatprep.subr.mxu1 %v133_v5  ;;  %v238_v23 = vld [vmem:[#allocation2 + $0x80] ss:$0 sm:$0xff] }
  0x16   :  { %270 = vmatpush3.msra.mxu1 %v133_v5  ;;  %p332_p9 = pnand %p331_p8, %p325_p5 }
  0x17   :  { %271 = vmatprep.subr.mxu1 %v132_v6 }
  0x18   :  { %272 = vmatpush3.msra.mxu1 %v132_v6 }
  0x19   :  { %273 = vmatprep.subr.mxu1 %v131_v7 }
  0x1a   :  { %274 = vmatpush3.msra.mxu1 %v131_v7 }
  0x1b   :  { %275 = vmatprep.subr.mxu1 %v130_v8 }
  0x1c   :  { %276 = vmatpush3.msra.mxu1 %v130_v8 }
  0x1d   :  { %277 = vmatprep.subr.mxu1 %v129_v9 }
  0x1e   :  { %278 = vmatpush3.msra.mxu1 %v129_v9 }
  0x1f   :  { %279 = vmatprep.subr.mxu1 %v128_v10 }
  0x20   :  { %280 = vmatpush3.msra.mxu1 %v128_v10 }
  0x21   :  { %281 = vmatprep.subr.mxu1 %v127_v11 }
  0x22   :  { %282 = vmatpush3.msra.mxu1 %v127_v11 }
  0x23   :  { %283 = vmatprep.subr.mxu1 %v126_v12 }
  0x24   :  { %284 = vmatpush3.msra.mxu1 %v126_v12 }
  0x25   :  { %285 = vmatprep.subr.mxu1 %v125_v13 }
  0x26   :  { %286 = vmatpush3.msra.mxu1 %v125_v13 }
  0x27   :  { %287 = vmatprep.subr.mxu1 %v124_v14 }
  0x28   :  { %288 = vmatpush3.msra.mxu1 %v124_v14 }
  0x29   :  { %289 = vmatprep.subr.mxu1 %v123_v15 }
  0x2a   :  { %290 = vmatpush3.msra.mxu1 %v123_v15 }
  0x2b   :  { %291 = vmatprep.subr.mxu1 %v122_v16 }
  0x2c   :  { %292 = vmatpush3.msra.mxu1 %v122_v16 }
  0x2d   :  { %293 = vmatprep.subr.mxu1 %v121_v17 }
  0x2e   :  { %294 = vmatpush3.msra.mxu1 %v121_v17 }
  0x2f   :  { %295 = vmatprep.subr.mxu1 %v120_v18 }
  0x30   :  { %296 = vmatpush3.msra.mxu1 %v120_v18 }
  0xd1   :  { %v264_v19 = vpop.f32.mrf.mxu0 }
  0xd2   :  { %v119_v22 = vmax.f32 %v264_v19, 0.0 }
  0xd3   :  { %v109_v20 = vpop.f32.mrf.mxu0 }
  0xd4   :  { %v118_v21 = vmax.f32 %v109_v20, 0.0 }
  0xd6   :  { %297 = vmatprep.mubr.f32.mxu1 %v118_v21 }
  0xd7   :  { %298 = vmatmul.mubr.f32.vlgmr.msra.gmra.mxu1 %v119_v22 }
 0x197   :  { %v299_v24 = vpop.f32.mrf.mxu1 }
 0x198   :  { %v213_v25 = vadd.f32 %v299_v24, %v238_v23 }
 0x199   :  { %v207_v26 = vpop.f32.mrf.mxu1 }
 0x19a   :  { %217 = vst [vmem:[#allocation5 + $0x8] sm:$0xff] %v213_v25  ;;  %v208_v27 = vadd.f32 %v238_v23, %v207_v26 }
 0x19c   :  { %216 = vst [vmem:[#allocation5] sm:$0xff] %v208_v27 }
 0x19d   :  { %335 = shalt.err (!%p332_p9)
}
 0x19e   :  { %229 = dma.vmem_to_hbm [thread:$0]  %s224_s1, 256, %s396_s3, [#allocation4], %s349_s15, %s349_s15, %s350_s16  }
 0x19f   :  { %346 = dma.done.wait [#allocation4], 256  }
 0x1a0   :  { %347 = vsyncadd [#allocation4], 4294967040 }
 0x1a1   :  { %233 = vsyncpa [#allocation3], 1 }
 0x1a2   :  { %234 = vsyncpa [#allocation4], 1 }

</bundles_post_ra>
